<compile_context>
chip_gen: v5e
topology: v5e:2x2
jax: 0.10.0
libtpu: 0.0.40
codegen_flags: <defaults>
</compile_context>

<pallas_src>
import functools

import jax
import jax.numpy as jnp
from jax.experimental import pallas as pl
from jax.experimental.pallas import tpu as pltpu

BN_EPS = 1e-5
LANE = 128


def _round_up(n, m=LANE):
    return ((n + m - 1) // m) * m


def _bn_relu(h, gamma, beta):
    # Training-mode BatchNorm1d (batch mean, biased batch variance) + ReLU.
    # Centered variance for numerical robustness (review concern).
    mean = jnp.mean(h, axis=0, keepdims=True)
    d = h - mean
    var = jnp.mean(d * d, axis=0, keepdims=True)
    return jnp.maximum(d * (gamma * jax.lax.rsqrt(var + BN_EPS)) + beta, 0.0)


def mlp_head_kernel(x_ref, p_ref, o_ref, *, in_dim, hid, cls):
    # p_ref: (4, R, C) packed params
    #   slot 0: w1 (rows 0..in_dim-1 real, rest zero)     slot 1: w2
    #   slot 2: wo (cols 0..cls-1 real, rest zero)        slot 3: row vectors
    #           row 0: gamma1  row 1: beta1  row 2: gamma2  row 3: beta2  row 4: bias_out
    x = x_ref[...]                              # (B, in_dim), unpadded

    w1 = p_ref[0][:in_dim, :hid]                # static, sublane-aligned slices (cheap)
    w2 = p_ref[1][:hid, :hid]
    wo = p_ref[2][:hid, :cls]
    v = p_ref[3]
    g1, be1 = v[0:1, :hid], v[1:2, :hid]
    g2, be2 = v[2:3, :hid], v[3:4, :hid]
    bo = v[4:5, :cls]

    # layer 1: Linear (bias dropped: exactly cancelled by BN mean subtraction) -> BN -> ReLU
    h = jnp.dot(x, w1, preferred_element_type=jnp.float32)
    h = _bn_relu(h, g1, be1)

    # layer 2: Linear (bias dropped) -> BN -> ReLU
    h = jnp.dot(h, w2, preferred_element_type=jnp.float32)
    h = _bn_relu(h, g2, be2)

    # output layer: Linear (bias kept)
    out = jnp.dot(h, wo, preferred_element_type=jnp.float32) + bo
    o_ref[...] = out.astype(o_ref.dtype)


def pack_params(params):
    """Pad weights to lane-dense shapes and pack everything into one (4, R, C) tensor.
    Done once, outside the hot path. b1/b2 are intentionally NOT packed (dead under
    training-mode BatchNorm)."""
    in_dim, hid = params["w1"].shape
    cls = params["wo"].shape[1]
    hid_p, cls_p = _round_up(hid), _round_up(cls)
    R = max(_round_up(in_dim), hid_p)
    C = max(hid_p, cls_p)

    def slot(a):
        return jnp.pad(a, ((0, R - a.shape[0]), (0, C - a.shape[1])))

    # gamma padded with zeros (not ones) so padded lanes stay exactly 0 through BN/ReLU.
    vec = jnp.zeros((R, C), jnp.float32)
    vec = vec.at[0, :hid].set(params["g1"][0])
    vec = vec.at[1, :hid].set(params["be1"][0])
    vec = vec.at[2, :hid].set(params["g2"][0])
    vec = vec.at[3, :hid].set(params["be2"][0])
    vec = vec.at[4, :cls].set(params["bo"][0])

    stack = jnp.stack(
        [slot(params["w1"]), slot(params["w2"]), slot(params["wo"]), vec], axis=0
    )  # (4, R, C): a single input array -> a single DMA
    return {"params": stack, "in_dim": in_dim, "hid_pad": hid_p,
            "cls": cls, "cls_pad": cls_p}


def mlp_head(x, packed):
    B = x.shape[0]
    kern = functools.partial(
        mlp_head_kernel,
        in_dim=packed["in_dim"], hid=packed["hid_pad"], cls=packed["cls_pad"])
    vmem = pl.BlockSpec(memory_space=pltpu.MemorySpace.VMEM)
    out = pl.pallas_call(
        kern,
        out_shape=jax.ShapeDtypeStruct((B, packed["cls_pad"]), jnp.float32),
        in_specs=[vmem, vmem],
        out_specs=vmem,
    )(x, packed["params"])
    # Padded class lanes are exact zeros; slice them off for the module's output shape.
    return out[:, :packed["cls"]]


def init_params(key, input_size, hidden_dim, n_classes):
    """Deterministic synthetic init (PyTorch-style uniform). Linear weights stored as (in, out)."""
    ks = jax.random.split(key, 6)
    s1 = 1.0 / jnp.sqrt(input_size)
    sh = 1.0 / jnp.sqrt(hidden_dim)
    return {
        "w1": jax.random.uniform(ks[0], (input_size, hidden_dim), jnp.float32, -s1, s1),
        "b1": jax.random.uniform(ks[1], (1, hidden_dim), jnp.float32, -s1, s1),
        "g1": jnp.ones((1, hidden_dim), jnp.float32),
        "be1": jnp.zeros((1, hidden_dim), jnp.float32),
        "w2": jax.random.uniform(ks[2], (hidden_dim, hidden_dim), jnp.float32, -sh, sh),
        "b2": jax.random.uniform(ks[3], (1, hidden_dim), jnp.float32, -sh, sh),
        "g2": jnp.ones((1, hidden_dim), jnp.float32),
        "be2": jnp.zeros((1, hidden_dim), jnp.float32),
        "wo": jax.random.uniform(ks[4], (hidden_dim, n_classes), jnp.float32, -sh, sh),
        "bo": jax.random.uniform(ks[5], (1, n_classes), jnp.float32, -sh, sh),
    }


def _bn_relu_ref(h, gamma, beta):
    mean = jnp.mean(h, axis=0, keepdims=True)
    var = jnp.mean((h - mean) ** 2, axis=0, keepdims=True)
    return jnp.maximum((h - mean) * jax.lax.rsqrt(var + BN_EPS) * gamma + beta, 0.0)


def mlp_head_ref(x, p):
    # Reference keeps b1/b2 to confirm their exact cancellation under training-mode BN.
    h = x @ p["w1"] + p["b1"]
    h = _bn_relu_ref(h, p["g1"], p["be1"])
    h = h @ p["w2"] + p["b2"]
    h = _bn_relu_ref(h, p["g2"], p["be2"])
    return h @ p["wo"] + p["bo"]


if __name__ == "__main__":
    # MLPHead(input_size=32, n_classes=8, n_layers=3, hidden_dim=32); batch=8 (>1 for BN).
    B, INPUT_SIZE, HIDDEN_DIM, N_CLASSES = 8, 32, 32, 8

    key = jax.random.PRNGKey(0)
    kx, kp = jax.random.split(key)
    x = jax.random.normal(kx, (B, INPUT_SIZE), jnp.float32)
    params = init_params(kp, INPUT_SIZE, HIDDEN_DIM, N_CLASSES)

    packed = pack_params(params)
    out = mlp_head(x, packed)
    jax.block_until_ready(out)

    ref = mlp_head_ref(x, params)
    assert out.shape == (B, N_CLASSES)
    assert jnp.allclose(out, ref, atol=1e-4, rtol=1e-4), float(jnp.max(jnp.abs(out - ref)))

    print("KERNEL_OK")
</pallas_src>

<mosaic_0001>
module attributes {stable_mosaic.version = 11 : i64} {
  func.func @mlp_head_kernel(%arg0: memref<8x32xf32, #tpu.memory_space<vmem>>, %arg1: memref<4x128x128xf32, #tpu.memory_space<vmem>>, %arg2: memref<8x128xf32, #tpu.memory_space<vmem>>) attributes {dimension_semantics = [], scalar_prefetch = 0 : i64, scratch_operands = 0 : i64, tpu.core_type = #tpu.core_type<tc>} {
    %c0 = arith.constant 0 : index
    %c0_0 = arith.constant 0 : index
    %0 = vector.load %arg0[%c0, %c0_0] : memref<8x32xf32, #tpu.memory_space<vmem>>, vector<8x32xf32>
    %c0_1 = arith.constant 0 : index
    %c0_2 = arith.constant 0 : index
    %c0_3 = arith.constant 0 : index
    %1 = vector.load %arg1[%c0_1, %c0_2, %c0_3] : memref<4x128x128xf32, #tpu.memory_space<vmem>>, vector<1x128x128xf32>
    %2 = vector.shape_cast %1 : vector<1x128x128xf32> to vector<128x128xf32>
    %3 = vector.extract_strided_slice %2 {offsets = [0, 0], sizes = [32, 128], strides = [1, 1]} : vector<128x128xf32> to vector<32x128xf32>
    %c1 = arith.constant 1 : index
    %c0_4 = arith.constant 0 : index
    %c0_5 = arith.constant 0 : index
    %4 = vector.load %arg1[%c1, %c0_4, %c0_5] : memref<4x128x128xf32, #tpu.memory_space<vmem>>, vector<1x128x128xf32>
    %5 = vector.shape_cast %4 : vector<1x128x128xf32> to vector<128x128xf32>
    %c2 = arith.constant 2 : index
    %c0_6 = arith.constant 0 : index
    %c0_7 = arith.constant 0 : index
    %6 = vector.load %arg1[%c2, %c0_6, %c0_7] : memref<4x128x128xf32, #tpu.memory_space<vmem>>, vector<1x128x128xf32>
    %7 = vector.shape_cast %6 : vector<1x128x128xf32> to vector<128x128xf32>
    %c3 = arith.constant 3 : index
    %c0_8 = arith.constant 0 : index
    %c0_9 = arith.constant 0 : index
    %8 = vector.load %arg1[%c3, %c0_8, %c0_9] : memref<4x128x128xf32, #tpu.memory_space<vmem>>, vector<1x128x128xf32>
    %9 = vector.shape_cast %8 : vector<1x128x128xf32> to vector<128x128xf32>
    %10 = vector.extract_strided_slice %9 {offsets = [0, 0], sizes = [1, 128], strides = [1, 1]} : vector<128x128xf32> to vector<1x128xf32>
    %11 = vector.extract_strided_slice %9 {offsets = [1, 0], sizes = [1, 128], strides = [1, 1]} : vector<128x128xf32> to vector<1x128xf32>
    %12 = vector.extract_strided_slice %9 {offsets = [2, 0], sizes = [1, 128], strides = [1, 1]} : vector<128x128xf32> to vector<1x128xf32>
    %13 = vector.extract_strided_slice %9 {offsets = [3, 0], sizes = [1, 128], strides = [1, 1]} : vector<128x128xf32> to vector<1x128xf32>
    %14 = vector.extract_strided_slice %9 {offsets = [4, 0], sizes = [1, 128], strides = [1, 1]} : vector<128x128xf32> to vector<1x128xf32>
    %cst = arith.constant dense<0.000000e+00> : vector<8x128xf32>
    %15 = tpu.matmul %0, %3, %cst {dimension_numbers = #tpu.dot_dimension_numbers<[1], [0], [0], [1], [0, 0, 1, 1], [], []>} : vector<8x32xf32>, vector<32x128xf32>, vector<8x128xf32> -> vector<8x128xf32>
    %cst_10 = arith.constant dense<0.000000e+00> : vector<128xf32>
    %16 = vector.multi_reduction <add>, %15, %cst_10 [0] : vector<8x128xf32> to vector<128xf32>
    %17 = vector.shape_cast %16 : vector<128xf32> to vector<1x128xf32>
    %cst_11 = arith.constant 8.000000e+00 : f32
    %18 = vector.broadcast %cst_11 : f32 to vector<1x128xf32>
    %19 = arith.divf %17, %18 : vector<1x128xf32>
    %20 = vector.broadcast %19 : vector<1x128xf32> to vector<8x128xf32>
    %21 = arith.subf %15, %20 : vector<8x128xf32>
    %22 = arith.mulf %21, %21 : vector<8x128xf32>
    %cst_12 = arith.constant dense<0.000000e+00> : vector<128xf32>
    %23 = vector.multi_reduction <add>, %22, %cst_12 [0] : vector<8x128xf32> to vector<128xf32>
    %24 = vector.shape_cast %23 : vector<128xf32> to vector<1x128xf32>
    %cst_13 = arith.constant 8.000000e+00 : f32
    %25 = vector.broadcast %cst_13 : f32 to vector<1x128xf32>
    %26 = arith.divf %24, %25 : vector<1x128xf32>
    %cst_14 = arith.constant 9.99999974E-6 : f32
    %27 = vector.broadcast %cst_14 : f32 to vector<1x128xf32>
    %28 = arith.addf %26, %27 : vector<1x128xf32>
    %29 = math.rsqrt %28 : vector<1x128xf32>
    %30 = arith.mulf %10, %29 : vector<1x128xf32>
    %31 = vector.broadcast %30 : vector<1x128xf32> to vector<8x128xf32>
    %32 = arith.mulf %21, %31 : vector<8x128xf32>
    %33 = vector.broadcast %11 : vector<1x128xf32> to vector<8x128xf32>
    %34 = arith.addf %32, %33 : vector<8x128xf32>
    %cst_15 = arith.constant 0.000000e+00 : f32
    %35 = vector.broadcast %cst_15 : f32 to vector<8x128xf32>
    %36 = arith.maximumf %34, %35 : vector<8x128xf32>
    %cst_16 = arith.constant dense<0.000000e+00> : vector<8x128xf32>
    %37 = tpu.matmul %36, %5, %cst_16 {dimension_numbers = #tpu.dot_dimension_numbers<[1], [0], [0], [1], [0, 0, 1, 1], [], []>} : vector<8x128xf32>, vector<128x128xf32>, vector<8x128xf32> -> vector<8x128xf32>
    %cst_17 = arith.constant dense<0.000000e+00> : vector<128xf32>
    %38 = vector.multi_reduction <add>, %37, %cst_17 [0] : vector<8x128xf32> to vector<128xf32>
    %39 = vector.shape_cast %38 : vector<128xf32> to vector<1x128xf32>
    %cst_18 = arith.constant 8.000000e+00 : f32
    %40 = vector.broadcast %cst_18 : f32 to vector<1x128xf32>
    %41 = arith.divf %39, %40 : vector<1x128xf32>
    %42 = vector.broadcast %41 : vector<1x128xf32> to vector<8x128xf32>
    %43 = arith.subf %37, %42 : vector<8x128xf32>
    %44 = arith.mulf %43, %43 : vector<8x128xf32>
    %cst_19 = arith.constant dense<0.000000e+00> : vector<128xf32>
    %45 = vector.multi_reduction <add>, %44, %cst_19 [0] : vector<8x128xf32> to vector<128xf32>
    %46 = vector.shape_cast %45 : vector<128xf32> to vector<1x128xf32>
    %cst_20 = arith.constant 8.000000e+00 : f32
    %47 = vector.broadcast %cst_20 : f32 to vector<1x128xf32>
    %48 = arith.divf %46, %47 : vector<1x128xf32>
    %cst_21 = arith.constant 9.99999974E-6 : f32
    %49 = vector.broadcast %cst_21 : f32 to vector<1x128xf32>
    %50 = arith.addf %48, %49 : vector<1x128xf32>
    %51 = math.rsqrt %50 : vector<1x128xf32>
    %52 = arith.mulf %12, %51 : vector<1x128xf32>
    %53 = vector.broadcast %52 : vector<1x128xf32> to vector<8x128xf32>
    %54 = arith.mulf %43, %53 : vector<8x128xf32>
    %55 = vector.broadcast %13 : vector<1x128xf32> to vector<8x128xf32>
    %56 = arith.addf %54, %55 : vector<8x128xf32>
    %cst_22 = arith.constant 0.000000e+00 : f32
    %57 = vector.broadcast %cst_22 : f32 to vector<8x128xf32>
    %58 = arith.maximumf %56, %57 : vector<8x128xf32>
    %cst_23 = arith.constant dense<0.000000e+00> : vector<8x128xf32>
    %59 = tpu.matmul %58, %7, %cst_23 {dimension_numbers = #tpu.dot_dimension_numbers<[1], [0], [0], [1], [0, 0, 1, 1], [], []>} : vector<8x128xf32>, vector<128x128xf32>, vector<8x128xf32> -> vector<8x128xf32>
    %60 = vector.broadcast %14 : vector<1x128xf32> to vector<8x128xf32>
    %61 = arith.addf %59, %60 : vector<8x128xf32>
    %c0_24 = arith.constant 0 : index
    %c0_25 = arith.constant 0 : index
    %62 = vector.load %arg2[%c0_24, %c0_25] : memref<8x128xf32, #tpu.memory_space<vmem>>, vector<8x128xf32>
    tpu.vector_store %arg2[%c0_24, %c0_25], %61 {strides = array<i32>} : memref<8x128xf32, #tpu.memory_space<vmem>>, vector<8x128xf32>,
    return
  }
}

</mosaic_0001>

<bundles_post_ra>
// kernel: tpu_custom_call.1
= control target key start
LH: loop header
LB: loop body
LE: loop exit
PB: predicated region body
PF: predicated region fallthrough
CT: control target
= control target key end

     0   :  { %7 = vsyncpa [#allocation3], 0  ;;  %s374_s0 = inlined_call_operand.hbm [shape: f32[8,32], index: 0, kind: input, shape index: {}]   ;;  %s375_s1 = inlined_call_operand.hbm [shape: f32[4,128,128], index: 1, kind: input, shape index: {}]   ;;  %s376_s2 = inlined_call_operand.hbm [shape: f32[8,128], index: 2, kind: output, shape index: {}]  }
   0x1   :  { %8 = vsyncpa [#allocation6], 0 }
   0x2   :  { %9 = vsyncpa [#allocation4], 0  ;;  %s15_s11 = sshll.u32 %s374_s0, 4  ;;  %s331_s12 = smov [#allocation2]   ;;  %s16_s11 = int_to_ptr.hbm [resolvable:$true] %s15_s11 }
   0x3   :  { %s17_s13 = sshll.u32 %s331_s12, 4  ;;  %s25_s16 = sshll.u32 %s375_s1, 4  ;;  %s18_s13 = int_to_ptr.vmem [resolvable:$true] %s17_s13  ;;  %s26_s16 = int_to_ptr.hbm [resolvable:$true] %s25_s16 }
   0x4   :  { %20 = dma.hbm_to_vmem [thread:$0]  %s16_s11, 128, %s18_s13, [#allocation3]  }
   0x5   :  { %s332_s17 = smov [#allocation5]   ;;  %s333_s19 = smov 128  }
   0x6   :  { %s27_s18 = sshll.u32 %s332_s17, 4  ;;  %s334_s20 = smov 8   ;;  %s28_s18 = int_to_ptr.vmem [resolvable:$true] %s27_s18 }
   0x7   :  { %33 = dma.hbm_to_vmem [thread:$0]  %s26_s16, 8192, %s28_s18, [#allocation6], %s333_s19, %s333_s19, %s334_s20  }
   0x8   :  { %325 = dma.done.wait [#allocation3], 128  }
   0x9   :  { %326 = vsyncadd [#allocation3], 4294967168 }
   0xa   :  { %327 = dma.done.wait [#allocation6], 8192  }
   0xb   :  { %328 = vsyncadd [#allocation6], 4294959104  ;;  %v46_v0 = vld [vmem:[#allocation5 + $0x18] sm:$0xff]  ;;  %v45_v1 = vld [vmem:[#allocation5 + $0x10] sm:$0xff]  ;;  %vm83_vm0 = vcmask 261120   ;;  %v335_v5 = vmov 8.0  }
   0xc   :  { %99 = vmatpush.msra.mxu0 %v46_v0  ;;  %v44_v2 = vld [vmem:[#allocation5 + $0x8] sm:$0xff]  ;;  %v43_v3 = vld [vmem:[#allocation5] sm:$0xff]  ;;  %v42_v4 = vld [vmem:[#allocation2] sm:$0xff]  ;;  %247 = vrcp.f32 %v335_v5  ;;  %s336_s0 = smov [#allocation7]   ;;  %s229_s23 = sshll.u32 %s376_s2, 4  ;;  %s230_s23 = int_to_ptr.hbm [resolvable:$true] %s229_s23 }
   0xd   :  { %v63_v9 = vld [vmem:[#allocation5 + $0xf8] sm:$0xff]  ;;  %v62_v12 = vld [vmem:[#allocation5 + $0xf0] sm:$0xff]  ;;  %v61_v15 = vld [vmem:[#allocation5 + $0xe8] sm:$0xff]  ;;  %s227_s1 = sshll.u32 %s336_s0, 4  ;;  %s228_s1 = int_to_ptr.vmem [resolvable:$true] %s227_s1 }
   0xe   :  { %100 = vmatpush.msra.mxu0 %v45_v1  ;;  %147 = vmatpush.msra.mxu1 %v63_v9  ;;  %v60_v17 = vld [vmem:[#allocation5 + $0xe0] sm:$0xff]  ;;  %v59_v20 = vld [vmem:[#allocation5 + $0xd8] sm:$0xff]  ;;  %v58_v22 = vld [vmem:[#allocation5 + $0xd0] sm:$0xff] }
   0xf   :  { %v57_v25 = vld [vmem:[#allocation5 + $0xc8] sm:$0xff]  ;;  %v56_v27 = vld [vmem:[#allocation5 + $0xc0] sm:$0xff]  ;;  %v55_v29 = vld [vmem:[#allocation5 + $0xb8] sm:$0xff] }
  0x10   :  { %101 = vmatpush.msra.mxu0 %v44_v2  ;;  %148 = vmatpush.msra.mxu1 %v62_v12  ;;  %v54_v31 = vld [vmem:[#allocation5 + $0xb0] sm:$0xff]  ;;  %v53_v33 = vld [vmem:[#allocation5 + $0xa8] sm:$0xff]  ;;  %v52_v35 = vld [vmem:[#allocation5 + $0xa0] sm:$0xff] }
  0x11   :  { %v51_v37 = vld [vmem:[#allocation5 + $0x98] sm:$0xff]  ;;  %v50_v39 = vld [vmem:[#allocation5 + $0x90] sm:$0xff]  ;;  %v49_v40 = vld [vmem:[#allocation5 + $0x88] sm:$0xff] }
  0x12   :  { %102 = vmatpush.msra.mxu0 %v43_v3  ;;  %v248_v6 = vpop.eup %247  ;;  %149 = vmatpush.msra.mxu1 %v61_v15  ;;  %v48_v42 = vld [vmem:[#allocation5 + $0x80] sm:$0xff]  ;;  %v80_v60 = vld [vmem:[#allocation5 + $0x178] sm:$0xff]  ;;  %v79_v63 = vld [vmem:[#allocation5 + $0x170] sm:$0xff] }
  0x13   :  { %240 = vmatmul.msk.f32.vlgmr.msra.gmra.mxu0 %vm83_vm0, %v42_v4  ;;  %v114_v7 = vmul.f32 8.0, %v248_v6  ;;  %vm118_vm1 = vweird.f32 %v248_v6  ;;  %v362_v51 = vld [vmem:[#allocation5 + $0x180] sm:$0xff]  ;;  %201 = vmatpush.msra.mxu2 %v80_v60  ;;  %v78_v1 = vld [vmem:[#allocation5 + $0x168] sm:$0xff]  ;;  %v76_v5 = vld [vmem:[#allocation5 + $0x158] sm:$0xff] }
  0x14   :  { %150 = vmatpush.msra.mxu1 %v60_v17  ;;  %v144_v56 = vperm.slane %v362_v51, 1  ;;  %v77_v3 = vld [vmem:[#allocation5 + $0x160] sm:$0xff]  ;;  %v74_v9 = vld [vmem:[#allocation5 + $0x148] sm:$0xff]  ;;  %v71_v15 = vld [vmem:[#allocation5 + $0x130] sm:$0xff] }
  0x15   :  { %v115_v8 = vsub.f32 1.0, %v114_v7  ;;  %202 = vmatpush.msra.mxu2 %v79_v63  ;;  %v75_v7 = vld [vmem:[#allocation5 + $0x150] sm:$0xff]  ;;  %v70_v17 = vld [vmem:[#allocation5 + $0x128] sm:$0xff] }
  0x16   :  { %151 = vmatpush.msra.mxu1 %v59_v20 }
  0x17   :  { %v116_v13 = vmul.f32 %v248_v6, %v115_v8  ;;  %203 = vmatpush.msra.mxu2 %v78_v1 }
  0x18   :  { %152 = vmatpush.msra.mxu1 %v58_v22 }
  0x19   :  { %v117_v18 = vadd.f32 %v248_v6, %v116_v13  ;;  %204 = vmatpush.msra.mxu2 %v77_v3  ;;  %v72_v13 = vld [vmem:[#allocation5 + $0x138] sm:$0xff] }
  0x1a   :  { %153 = vmatpush.msra.mxu1 %v57_v25  ;;  %v66_v25 = vld [vmem:[#allocation5 + $0x108] sm:$0xff] }
  0x1b   :  { %v358_v23 = vsel %vm118_vm1, %v248_v6, %v117_v18  ;;  %205 = vmatpush.msra.mxu2 %v76_v5 }
  0x1c   :  { %154 = vmatpush.msra.mxu1 %v56_v27  ;;  %v65_v27 = vld [vmem:[#allocation5 + $0x100] sm:$0xff] }
  0x1d   :  { %206 = vmatpush.msra.mxu2 %v75_v7 }
  0x1e   :  { %155 = vmatpush.msra.mxu1 %v55_v29 }
  0x1f   :  { %207 = vmatpush.msra.mxu2 %v74_v9 }
  0x20   :  { %156 = vmatpush.msra.mxu1 %v54_v31 }
  0x22   :  { %157 = vmatpush.msra.mxu1 %v53_v33 }
  0x24   :  { %158 = vmatpush.msra.mxu1 %v52_v35 }
  0x26   :  { %159 = vmatpush.msra.mxu1 %v51_v37 }
  0x28   :  { %160 = vmatpush.msra.mxu1 %v50_v39 }
  0x2a   :  { %161 = vmatpush.msra.mxu1 %v49_v40  ;;  %v197_v40 = vperm.slane %v362_v51, 3 }
  0x2c   :  { %162 = vmatpush.msra.mxu1 %v48_v42 }
  0x90   :  { %v104_v10 = vpop.f32.mrf.mxu0 }
  0x91   :  { %v107_v11 = vrot.slane %v104_v10, 4 }
  0x93   :  { %v108_v14 = vadd.f32 %v107_v11, %v104_v10  ;;  %v73_v11 = vld [vmem:[#allocation5 + $0x140] sm:$0xff] }
  0x94   :  { %208 = vmatpush.msra.mxu2 %v73_v11 }
  0x95   :  { %v109_v16 = vrot.slane %v108_v14, 2 }
  0x96   :  { %209 = vmatpush.msra.mxu2 %v72_v13 }
  0x97   :  { %v110_v19 = vadd.f32 %v109_v16, %v108_v14 }
  0x98   :  { %210 = vmatpush.msra.mxu2 %v71_v15 }
  0x99   :  { %v111_v21 = vrot.slane %v110_v19, 1 }
  0x9a   :  { %211 = vmatpush.msra.mxu2 %v70_v17 }
  0x9b   :  { %v112_v24 = vadd.f32 %v111_v21, %v110_v19  ;;  %v69_v19 = vld [vmem:[#allocation5 + $0x120] sm:$0xff]  ;;  %v68_v21 = vld [vmem:[#allocation5 + $0x118] sm:$0xff] }
  0x9c   :  { %212 = vmatpush.msra.mxu2 %v69_v19 }
  0x9d   :  { %v120_v26 = vmul.f32 %v358_v23, %v112_v24  ;;  %v67_v24 = vld [vmem:[#allocation5 + $0x110] sm:$0xff] }
  0x9e   :  { %213 = vmatpush.msra.mxu2 %v68_v21 }
  0x9f   :  { %v121_v28 = vsub.f32 %v104_v10, %v120_v26 }
  0xa0   :  { %214 = vmatpush.msra.mxu2 %v67_v24 }
  0xa1   :  { %v122_v30 = vmul.f32 %v121_v28, %v121_v28 }
  0xa2   :  { %215 = vmatpush.msra.mxu2 %v66_v25 }
  0xa3   :  { %v123_v32 = vrot.slane %v122_v30, 4 }
  0xa4   :  { %216 = vmatpush.msra.mxu2 %v65_v27 }
  0xa5   :  { %v124_v34 = vadd.f32 %v123_v32, %v122_v30 }
  0xa7   :  { %v125_v36 = vrot.slane %v124_v34, 2 }
  0xa9   :  { %v126_v38 = vadd.f32 %v125_v36, %v124_v34 }
  0xab   :  { %v127_v41 = vrot.slane %v126_v38, 1 }
  0xad   :  { %v128_v43 = vadd.f32 %v127_v41, %v126_v38 }
  0xaf   :  { %v129_v44 = vmul.f32 %v128_v43, %v358_v23  ;;  %v200_v43 = vperm.slane %v362_v51, 4 }
  0xb1   :  { %v130_v45 = vadd.f32 1e-05, %v129_v44 }
  0xb3   :  { %249 = vrsqrt.f32 %v130_v45  ;;  %vm137_vm3 = vweird.f32 %v130_v45 }
  0xb9   :  { %v250_v46 = vpop.eup %249 }
  0xba   :  { %v132_v47 = vmul.f32 %v250_v46, %v130_v45  ;;  %vm138_vm2 = vweird.f32 %v250_v46 }
  0xbb   :  { %vm139_vm4 = vmor %vm137_vm3, %vm138_vm2 }
  0xbc   :  { %v133_v48 = vmul.f32 %v250_v46, %v132_v47 }
  0xbe   :  { %v134_v49 = vmul.f32 0.5, %v133_v48 }
  0xc0   :  { %v135_v50 = vsub.f32 1.5, %v134_v49 }
  0xc2   :  { %v136_v52 = vmul.f32 %v250_v46, %v135_v50 }
  0xc4   :  { %v140_v53 = vsel %vm139_vm4, %v250_v46, %v136_v52 }
  0xc5   :  { %v141_v54 = vmul.f32 %v140_v53, %v362_v51 }
  0xc7   :  { %v142_v55 = vperm.slane %v141_v54, 0 }
  0xc9   :  { %v143_v57 = vmul.f32 %v142_v55, %v121_v28 }
  0xcb   :  { %v145_v58 = vadd.f32 %v144_v56, %v143_v57 }
  0xcd   :  { %v146_v59 = vmax.f32 %v145_v58, 0.0 }
  0xcf   :  { %163 = vmatmul.f32.vlgmr.msra.gmra.mxu1 %v146_v59 }
 0x14c   :  { %v164_v61 = vpop.f32.mrf.mxu1 }
 0x14d   :  { %v167_v62 = vrot.slane %v164_v61, 4 }
 0x14f   :  { %v168_v0 = vadd.f32 %v167_v62, %v164_v61 }
 0x151   :  { %v169_v2 = vrot.slane %v168_v0, 2 }
 0x153   :  { %v170_v4 = vadd.f32 %v169_v2, %v168_v0 }
 0x155   :  { %v171_v6 = vrot.slane %v170_v4, 1 }
 0x157   :  { %v172_v8 = vadd.f32 %v171_v6, %v170_v4 }
 0x159   :  { %v173_v10 = vmul.f32 %v172_v8, %v358_v23 }
 0x15b   :  { %v174_v12 = vsub.f32 %v164_v61, %v173_v10 }
 0x15d   :  { %v175_v14 = vmul.f32 %v174_v12, %v174_v12 }
 0x15f   :  { %v176_v16 = vrot.slane %v175_v14, 4 }
 0x161   :  { %v177_v18 = vadd.f32 %v176_v16, %v175_v14 }
 0x163   :  { %v178_v20 = vrot.slane %v177_v18, 2 }
 0x165   :  { %v179_v22 = vadd.f32 %v178_v20, %v177_v18 }
 0x167   :  { %v180_v26 = vrot.slane %v179_v22, 1 }
 0x169   :  { %v181_v28 = vadd.f32 %v180_v26, %v179_v22 }
 0x16b   :  { %v182_v29 = vmul.f32 %v181_v28, %v358_v23 }
 0x16d   :  { %v183_v30 = vadd.f32 1e-05, %v182_v29 }
 0x16f   :  { %251 = vrsqrt.f32 %v183_v30  ;;  %vm190_vm6 = vweird.f32 %v183_v30 }
 0x175   :  { %v252_v31 = vpop.eup %251 }
 0x176   :  { %v185_v32 = vmul.f32 %v252_v31, %v183_v30  ;;  %vm191_vm5 = vweird.f32 %v252_v31 }
 0x177   :  { %vm192_vm7 = vmor %vm190_vm6, %vm191_vm5 }
 0x178   :  { %v186_v33 = vmul.f32 %v252_v31, %v185_v32 }
 0x17a   :  { %v187_v34 = vmul.f32 0.5, %v186_v33 }
 0x17c   :  { %v188_v35 = vsub.f32 1.5, %v187_v34 }
 0x17e   :  { %v189_v36 = vmul.f32 %v252_v31, %v188_v35 }
 0x180   :  { %v193_v37 = vsel %vm192_vm7, %v252_v31, %v189_v36 }
 0x181   :  { %v194_v38 = vmul.f32 %v193_v37, %v362_v51 }
 0x183   :  { %v195_v39 = vperm.slane %v194_v38, 2 }
 0x185   :  { %v196_v41 = vmul.f32 %v195_v39, %v174_v12 }
 0x187   :  { %v198_v42 = vadd.f32 %v197_v40, %v196_v41 }
 0x189   :  { %v199_v23 = vmax.f32 %v198_v42, 0.0 }
 0x18b   :  { %217 = vmatmul.f32.vlgmr.msra.gmra.mxu2 %v199_v23 }
 0x20e   :  { %v218_v44 = vpop.f32.mrf.mxu2 }
 0x20f   :  { %v219_v45 = vadd.f32 %v218_v44, %v200_v43 }
 0x211   :  { %221 = vst [vmem:[#allocation7] sm:$0xff] %v219_v45 }
 0x212   :  { %232 = dma.vmem_to_hbm [thread:$0]  %s228_s1, 128, %s230_s23, [#allocation4]  }
 0x213   :  { %329 = dma.done.wait [#allocation4], 128  }
 0x214   :  { %330 = vsyncadd [#allocation4], 4294967168 }
 0x215   :  { %237 = vsyncpa [#allocation3], 1 }
 0x216   :  { %238 = vsyncpa [#allocation6], 1 }
 0x217   :  { %239 = vsyncpa [#allocation4], 1 }

</bundles_post_ra>
